<compile_context>
chip_gen: v5e
topology: v5e:2x2
jax: 0.10.0
libtpu: 0.0.40
codegen_flags: <defaults>
</compile_context>

<pallas_src>
import jax
import jax.numpy as jnp
from jax.experimental import pallas as pl
from jax.experimental.pallas import tpu as pltpu


def cat_mm_kernel(x2_ref, o_ref):
    # Live compute: m = x2 @ x2, output = cat([m, m, m], axis=1).
    x2 = x2_ref[...]
    k = x2.shape[0]
    m = jnp.dot(x2, x2, preferred_element_type=jnp.float32).astype(o_ref.dtype)
    # Three direct column-slice stores (static Python loop): avoids the XLU
    # lane-packing a jnp.concatenate would generate.
    for i in range(3):
        o_ref[:, i * k:(i + 1) * k] = m


def cat_mm(x1, x2):
    # x1 participates only in dead mm(x1, x2) products; keep the module's
    # (x1, x2) signature but do not pass x1 to the kernel.
    del x1
    K, N = x2.shape
    assert K == N, "x2 must be square so mm(x2, x2) is valid"
    out_shape = jax.ShapeDtypeStruct((K, 3 * K), x2.dtype)
    itemsize = jnp.dtype(x2.dtype).itemsize
    cost = pl.CostEstimate(
        flops=2 * K * K * K,
        transcendentals=0,
        bytes_accessed=K * K * itemsize + K * 3 * K * itemsize,
    )
    # No grid: single invocation, whole arrays resident in VMEM.
    return pl.pallas_call(
        cat_mm_kernel,
        out_shape=out_shape,
        in_specs=[pl.BlockSpec(memory_space=pltpu.MemorySpace.VMEM)],
        out_specs=pl.BlockSpec(memory_space=pltpu.MemorySpace.VMEM),
        cost_estimate=cost,
    )(x2)


if __name__ == "__main__":
    key = jax.random.PRNGKey(0)
    k1, k2 = jax.random.split(key)
    # Small shapes consistent with the module: x1 (M, K), x2 square (K, K).
    M, K = 8, 32
    x1 = jax.random.normal(k1, (M, K), dtype=jnp.float32)
    x2 = jax.random.normal(k2, (K, K), dtype=jnp.float32)

    out = jax.block_until_ready(cat_mm(x1, x2))

    # Reference (pure JAX) check of the live semantics.
    v = jnp.dot(x2, x2)
    ref = jnp.concatenate([v, v, v], axis=1)
    assert out.shape == (K, 3 * K)
    assert jnp.allclose(out, ref, atol=1e-4, rtol=1e-4)

    print("KERNEL_OK")
</pallas_src>

<mosaic_0001>
module attributes {stable_mosaic.version = 11 : i64} {
  func.func @cat_mm_kernel(%arg0: memref<32x32xf32, #tpu.memory_space<vmem>>, %arg1: memref<32x96xf32, #tpu.memory_space<vmem>>) attributes {dimension_semantics = [], scalar_prefetch = 0 : i64, scratch_operands = 0 : i64, tpu.core_type = #tpu.core_type<tc>} {
    %c0 = arith.constant 0 : index
    %c0_0 = arith.constant 0 : index
    %0 = vector.load %arg0[%c0, %c0_0] : memref<32x32xf32, #tpu.memory_space<vmem>>, vector<32x32xf32>
    %cst = arith.constant dense<0.000000e+00> : vector<32x32xf32>
    %1 = tpu.matmul %0, %0, %cst {dimension_numbers = #tpu.dot_dimension_numbers<[1], [0], [0], [1], [0, 0, 1, 1], [], []>} : vector<32x32xf32>, vector<32x32xf32>, vector<32x32xf32> -> vector<32x32xf32>
    %c0_1 = arith.constant 0 : index
    %c0_2 = arith.constant 0 : index
    %2 = vector.load %arg1[%c0_1, %c0_2] : memref<32x96xf32, #tpu.memory_space<vmem>>, vector<32x32xf32>
    tpu.vector_store %arg1[%c0_1, %c0_2], %1 {strides = array<i32>} : memref<32x96xf32, #tpu.memory_space<vmem>>, vector<32x32xf32>,
    %c0_3 = arith.constant 0 : index
    %c32 = arith.constant 32 : index
    %3 = vector.load %arg1[%c0_3, %c32] : memref<32x96xf32, #tpu.memory_space<vmem>>, vector<32x32xf32>
    tpu.vector_store %arg1[%c0_3, %c32], %1 {strides = array<i32>} : memref<32x96xf32, #tpu.memory_space<vmem>>, vector<32x32xf32>,
    %c0_4 = arith.constant 0 : index
    %c64 = arith.constant 64 : index
    %4 = vector.load %arg1[%c0_4, %c64] : memref<32x96xf32, #tpu.memory_space<vmem>>, vector<32x32xf32>
    tpu.vector_store %arg1[%c0_4, %c64], %1 {strides = array<i32>} : memref<32x96xf32, #tpu.memory_space<vmem>>, vector<32x32xf32>,
    return
  }
}

</mosaic_0001>

<bundles_post_ra>
// kernel: tpu_custom_call.1
= control target key start
LH: loop header
LB: loop body
LE: loop exit
PB: predicated region body
PF: predicated region fallthrough
CT: control target
= control target key end

     0   :  { %6 = vsyncpa [#allocation3], 0  ;;  %s246_s0 = inlined_call_operand.hbm [shape: f32[32,32], index: 0, kind: input, shape index: {}]   ;;  %s247_s1 = inlined_call_operand.hbm [shape: f32[32,96], index: 1, kind: output, shape index: {}]  }
   0x1   :  { %7 = vsyncpa [#allocation4], 0  ;;  %s12_s8 = sshll.u32 %s246_s0, 4  ;;  %s206_s9 = smov [#allocation2]   ;;  %s13_s8 = int_to_ptr.hbm [resolvable:$true] %s12_s8 }
   0x2   :  { %s14_s10 = sshll.u32 %s206_s9, 4  ;;  %s207_s11 = smov 128   ;;  %s15_s10 = int_to_ptr.vmem [resolvable:$true] %s14_s10 }
   0x3   :  { %s208_s12 = smov 8  }
   0x4   :  { %20 = dma.hbm_to_vmem [thread:$0]  %s13_s8, 512, %s15_s10, [#allocation3], %s207_s11, %s207_s11, %s208_s12  }
   0x5   :  { %202 = dma.done.wait [#allocation3], 512  }
   0x6   :  { %203 = vsyncadd [#allocation3], 4294966784  ;;  %v28_v0 = vld [vmem:[#allocation2 + $0x18] sm:$0xff]  ;;  %v27_v1 = vld [vmem:[#allocation2 + $0x10] sm:$0xff]  ;;  %vm29_vm0 = vcmask 261120   ;;  %s209_s0 = smov 32  }
   0x7   :  { %54 = vmatpush.msra.mxu0 %v28_v0  ;;  %137 = vmatpush.msra.mxu2 %v28_v0  ;;  %v26_v2 = vld [vmem:[#allocation2 + $0x8] sm:$0xff]  ;;  %v25_v3 = vld [vmem:[#allocation2] sm:$0xff]  ;;  %s210_s13 = smov 64   ;;  %vm91_vm1 = vcmask 523520   ;;  %vm108_vm2 = vcmask 785920   ;;  %s211_s14 = smov [#allocation5]  }
   0x8   :  { %136 = vmatpush.msra.mxu1 %v28_v0  ;;  %138 = vmatpush.msra.mxu3 %v28_v0  ;;  %s117_s15 = sshll.u32 %s211_s14, 4  ;;  %s119_s18 = sshll.u32 %s247_s1, 4  ;;  %s118_s15 = int_to_ptr.vmem [resolvable:$true] %s117_s15  ;;  %s120_s18 = int_to_ptr.hbm [resolvable:$true] %s119_s18 }
   0x9   :  { %55 = vmatpush.msra.mxu0 %v27_v1  ;;  %140 = vmatpush.msra.mxu2 %v27_v1 }
   0xa   :  { %139 = vmatpush.msra.mxu1 %v27_v1  ;;  %141 = vmatpush.msra.mxu3 %v27_v1 }
   0xb   :  { %56 = vmatpush.msra.mxu0 %v26_v2  ;;  %143 = vmatpush.msra.mxu2 %v26_v2 }
   0xc   :  { %142 = vmatpush.msra.mxu1 %v26_v2  ;;  %144 = vmatpush.msra.mxu3 %v26_v2 }
   0xd   :  { %57 = vmatpush.msra.mxu0 %v25_v3  ;;  %146 = vmatpush.msra.mxu2 %v25_v3 }
   0xe   :  { %132 = vmatmul.msk.f32.vlgmr.msra.gmra.mxu0 %vm29_vm0, %v25_v3  ;;  %134 = vmatmul.msk.f32.vlgmr.msra.gmra.mxu2 %vm29_vm0, %v27_v1 }
   0xf   :  { %145 = vmatpush.msra.mxu1 %v25_v3  ;;  %147 = vmatpush.msra.mxu3 %v25_v3 }
  0x10   :  { %133 = vmatmul.msk.f32.vlgmr.msra.gmra.mxu1 %vm29_vm0, %v26_v2  ;;  %135 = vmatmul.msk.f32.vlgmr.msra.gmra.mxu3 %vm29_vm0, %v28_v0 }
  0x8b   :  { %v59_v4 = vpop.f32.mrf.mxu0 }
  0x8c   :  { %71 = vst.msk [vmem:[#allocation5] sm:$0xff] %vm29_vm0, %v59_v4  ;;  %79 = vrot.lane.b32.xlu0 %v59_v4, %s209_s0  ;;  %96 = vrot.lane.b32.xlu2 %v59_v4, %s210_s13 }
  0x8d   :  { %v62_v5 = vpop.f32.mrf.mxu1 }
  0x8e   :  { %72 = vst.msk [vmem:[#allocation5 + $0x8] sm:$0xff] %vm29_vm0, %v62_v5 }
  0x91   :  { %v65_v6 = vpop.f32.mrf.mxu2 }
  0x92   :  { %73 = vst.msk [vmem:[#allocation5 + $0x10] sm:$0xff] %vm29_vm0, %v65_v6  ;;  %83 = vrot.lane.b32.xlu1 %v65_v6, %s209_s0 }
  0x93   :  { %v68_v7 = vpop.f32.mrf.mxu3 }
  0x94   :  { %81 = vrot.lane.b32.xlu0 %v62_v5, %s209_s0  ;;  %74 = vst.msk [vmem:[#allocation5 + $0x18] sm:$0xff] %vm29_vm0, %v68_v7  ;;  %98 = vrot.lane.b32.xlu2 %v62_v5, %s210_s13 }
  0x9a   :  { %85 = vrot.lane.b32.xlu1 %v68_v7, %s209_s0 }
  0x9c   :  { %100 = vrot.lane.b32.xlu0 %v65_v6, %s210_s13 }
  0xa2   :  { %102 = vrot.lane.b32.xlu1 %v68_v7, %s210_s13 }
  0xe6   :  { %v97_v8 = vpop.permute.xlu2 %96 }
  0xee   :  { %v99_v12 = vpop.permute.xlu2 %98 }
  0xfe   :  { %v80_v9 = vpop.permute.xlu0 %79 }
  0xff   :  { %92 = vst.msk [vmem:[#allocation5] sm:$0xff] %vm91_vm1, %v80_v9 }
 0x100   :  { %109 = vst.msk [vmem:[#allocation5] sm:$0xff] %vm108_vm2, %v97_v8 }
 0x104   :  { %v84_v10 = vpop.permute.xlu1 %83 }
 0x105   :  { %94 = vst.msk [vmem:[#allocation5 + $0x10] sm:$0xff] %vm91_vm1, %v84_v10 }
 0x106   :  { %v82_v11 = vpop.permute.xlu0 %81 }
 0x107   :  { %93 = vst.msk [vmem:[#allocation5 + $0x8] sm:$0xff] %vm91_vm1, %v82_v11 }
 0x108   :  { %110 = vst.msk [vmem:[#allocation5 + $0x8] sm:$0xff] %vm108_vm2, %v99_v12 }
 0x10c   :  { %v86_v13 = vpop.permute.xlu1 %85 }
 0x10d   :  { %95 = vst.msk [vmem:[#allocation5 + $0x18] sm:$0xff] %vm91_vm1, %v86_v13 }
 0x10e   :  { %v101_v14 = vpop.permute.xlu0 %100 }
 0x10f   :  { %111 = vst.msk [vmem:[#allocation5 + $0x10] sm:$0xff] %vm108_vm2, %v101_v14 }
 0x114   :  { %v103_v15 = vpop.permute.xlu1 %102 }
 0x115   :  { %112 = vst.msk [vmem:[#allocation5 + $0x18] sm:$0xff] %vm108_vm2, %v103_v15 }
 0x116   :  { %125 = dma.vmem_to_hbm [thread:$0]  %s118_s15, 512, %s120_s18, [#allocation4], %s207_s11, %s207_s11, %s208_s12  }
 0x117   :  { %204 = dma.done.wait [#allocation4], 512  }
 0x118   :  { %205 = vsyncadd [#allocation4], 4294966784 }
 0x119   :  { %130 = vsyncpa [#allocation3], 1 }
 0x11a   :  { %131 = vsyncpa [#allocation4], 1 }

</bundles_post_ra>
